<compile_context>
chip_gen: v7x
topology: tpu7x:2x2x1
jax: 0.10.0
libtpu: 0.0.40
codegen_flags: <defaults>
</compile_context>

<pallas_src>
import functools

import jax
import jax.numpy as jnp
from jax import lax
from jax.experimental import pallas as pl
from jax.experimental.pallas import tpu as pltpu


def _bpr_loss_kernel(logit_ref, diag_ref, out_ref, acc_ref, *, ragged, total_b):
    i = pl.program_id(0)

    # Zero the partial-sum accumulator on the first grid step.
    @pl.when(i == 0)
    def _():
        acc_ref[...] = jnp.zeros_like(acc_ref)

    x = logit_ref[...].astype(jnp.float32)   # (TILE_B, B)
    d = diag_ref[...].astype(jnp.float32)    # (TILE_B, 1), broadcasts over lanes

    # diff[r, c] = logit[r, r] - logit[r, c]
    diff = d - x

    # Numerically stable log-sigmoid: min(x, 0) - log1p(exp(-|x|))
    log_sig = jnp.minimum(diff, 0.0) - jnp.log1p(jnp.exp(-jnp.abs(diff)))

    if ragged:
        # Mask rows of the (padded) last tile that fall past B.
        tile_b = x.shape[0]
        row = i * tile_b + lax.broadcasted_iota(jnp.int32, x.shape, 0)
        log_sig = jnp.where(row < total_b, log_sig, 0.0)

    # Per-tile sublane reduction into the lane-shaped accumulator (VPU add).
    acc_ref[...] += jnp.sum(log_sig, axis=0, keepdims=True)   # (1, B)

    # Single cross-lane reduction + negate + mean at the very last step.
    @pl.when(i == pl.num_programs(0) - 1)
    def _():
        out_ref[0, 0] = -jnp.sum(acc_ref[...]) / jnp.float32(total_b * total_b)


def _pick_tile_b(B: int, itemsize: int) -> int:
    """Row-tile size: biggest multiple of 8 whose (TILE_B, B) window stays
    within a conservative per-window VMEM budget (double-buffered by Pallas).
    Budget chosen so it is safe even on v7x (64 MiB VMEM per TC)."""
    budget_bytes = 8 * 1024 * 1024  # per in-flight logit window
    rows = budget_bytes // max(1, B * itemsize)
    rows = max(8, min(1024, (rows // 8) * 8))
    if rows >= B:
        return B  # single full-height tile (block == full dims is always legal)
    return rows


def bpr_loss(logit: jax.Array, tile_b: int | None = None) -> jax.Array:
    """Pallas TPU implementation of BPRLoss.forward. Returns a float32 scalar."""
    B, B2 = logit.shape
    assert B == B2, "BPRLoss expects a square (BxB) logit matrix"

    # Thin diagonal input computed in the wrapper (effectively free vs. the
    # in-kernel iota+mask+reduce it replaces).
    diag = jnp.diagonal(logit).reshape(B, 1)

    if tile_b is None:
        tile_b = _pick_tile_b(B, jnp.dtype(logit.dtype).itemsize)
    n_tiles = pl.cdiv(B, tile_b)
    ragged = (B % tile_b) != 0

    kernel = functools.partial(_bpr_loss_kernel, ragged=ragged, total_b=B)

    out = pl.pallas_call(
        kernel,
        out_shape=jax.ShapeDtypeStruct((1, 1), jnp.float32),
        grid=(n_tiles,),
        in_specs=[
            pl.BlockSpec((tile_b, B), lambda i: (i, 0)),   # logit row tile
            pl.BlockSpec((tile_b, 1), lambda i: (i, 0)),   # matching diag slice
        ],
        # Scalar reduction result lives in SMEM for the whole call.
        out_specs=pl.BlockSpec(memory_space=pltpu.MemorySpace.SMEM),
        scratch_shapes=[pltpu.VMEM((1, B), jnp.float32)],
        compiler_params=pltpu.CompilerParams(
            # Single grid axis is the reduction/accumulation axis.
            dimension_semantics=("arbitrary",),
            vmem_limit_bytes=64 * 1024 * 1024,
        ),
    )(logit, diag)
    return out[0, 0]


def _bpr_loss_ref(logit: jax.Array) -> jax.Array:
    """Plain-JAX reference mirroring the PyTorch forward."""
    diag = jnp.diagonal(logit).reshape(-1, 1)
    diff = diag - logit
    return -jnp.mean(jax.nn.log_sigmoid(diff))


if __name__ == "__main__":
    key = jax.random.PRNGKey(0)

    # Small shape consistent with the module: mini-batch logits are (B, B).
    B = 8
    logit = jax.random.normal(key, (B, B), dtype=jnp.float32)

    loss = jax.block_until_ready(bpr_loss(logit))
    ref = jax.block_until_ready(_bpr_loss_ref(logit.astype(jnp.float32)))
    assert jnp.allclose(loss, ref, rtol=1e-5, atol=1e-6), (loss, ref)

    # Also exercise the multi-tile + ragged-masking path (B not divisible by tile).
    B2 = 20
    logit2 = jax.random.normal(jax.random.PRNGKey(1), (B2, B2), dtype=jnp.float32)
    loss2 = jax.block_until_ready(bpr_loss(logit2, tile_b=8))
    ref2 = jax.block_until_ready(_bpr_loss_ref(logit2))
    assert jnp.allclose(loss2, ref2, rtol=1e-5, atol=1e-6), (loss2, ref2)

    print("KERNEL_OK")
</pallas_src>

<mosaic_0001>
module attributes {stable_mosaic.version = 11 : i64} {
  func.func @_bpr_loss_kernel(%arg0: i32, %arg1: memref<8x8xf32, #tpu.memory_space<vmem>>, %arg2: memref<8x1xf32, #tpu.memory_space<vmem>>, %arg3: memref<1x1xf32, #tpu.memory_space<smem>>, %arg4: memref<1x8xf32, #tpu.memory_space<vmem>>) attributes {dimension_semantics = [#tpu.dimension_semantics<arbitrary>], iteration_bounds = array<i64: 1>, scalar_prefetch = 0 : i64, scratch_operands = 1 : i64, tpu.core_type = #tpu.core_type<tc>, window_params = [{transform_indices = @transform_0, window_bounds = array<i64: 8, 8>}, {transform_indices = @transform_1, window_bounds = array<i64: 8, 1>}, {transform_indices = @transform_2, window_bounds = array<i64: 1, 1>}]} {
    %c0_i32 = arith.constant 0 : i32
    %0 = arith.cmpi eq, %arg0, %c0_i32 : i32
    %1 = arith.extui %0 : i1 to i32
    %c0_i32_0 = arith.constant 0 : i32
    %2 = arith.cmpi ne, %1, %c0_i32_0 : i32
    scf.if %2 {
      %cst_12 = arith.constant 0.000000e+00 : f32
      %23 = vector.broadcast %cst_12 : f32 to vector<1x8xf32>
      %c0_13 = arith.constant 0 : index
      %c0_14 = arith.constant 0 : index
      %24 = vector.load %arg4[%c0_13, %c0_14] : memref<1x8xf32, #tpu.memory_space<vmem>>, vector<1x8xf32>
      tpu.vector_store %arg4[%c0_13, %c0_14], %23 {strides = array<i32>} : memref<1x8xf32, #tpu.memory_space<vmem>>, vector<1x8xf32>,
    } else {
    }
    %c0 = arith.constant 0 : index
    %c0_1 = arith.constant 0 : index
    %3 = vector.load %arg1[%c0, %c0_1] : memref<8x8xf32, #tpu.memory_space<vmem>>, vector<8x8xf32>
    %c0_2 = arith.constant 0 : index
    %c0_3 = arith.constant 0 : index
    %4 = vector.load %arg2[%c0_2, %c0_3] : memref<8x1xf32, #tpu.memory_space<vmem>>, vector<8x1xf32>
    %5 = vector.broadcast %4 : vector<8x1xf32> to vector<8x8xf32>
    %6 = arith.subf %5, %3 : vector<8x8xf32>
    %cst = arith.constant 0.000000e+00 : f32
    %7 = vector.broadcast %cst : f32 to vector<8x8xf32>
    %8 = arith.minimumf %6, %7 : vector<8x8xf32>
    %9 = math.absf %6 : vector<8x8xf32>
    %cst_4 = arith.constant 0.000000e+00 : f32
    %10 = vector.broadcast %cst_4 : f32 to vector<8x8xf32>
    %11 = arith.subf %10, %9 : vector<8x8xf32>
    %12 = math.exp %11 : vector<8x8xf32>
    %13 = math.log1p %12 : vector<8x8xf32>
    %14 = arith.subf %8, %13 : vector<8x8xf32>
    %c0_5 = arith.constant 0 : index
    %c0_6 = arith.constant 0 : index
    %15 = vector.load %arg4[%c0_5, %c0_6] : memref<1x8xf32, #tpu.memory_space<vmem>>, vector<1x8xf32>
    %cst_7 = arith.constant dense<0.000000e+00> : vector<8xf32>
    %16 = vector.multi_reduction <add>, %14, %cst_7 [0] : vector<8x8xf32> to vector<8xf32>
    %17 = vector.shape_cast %16 : vector<8xf32> to vector<1x8xf32>
    %18 = arith.addf %15, %17 : vector<1x8xf32>
    %c0_8 = arith.constant 0 : index
    %c0_9 = arith.constant 0 : index
    %19 = vector.load %arg4[%c0_8, %c0_9] : memref<1x8xf32, #tpu.memory_space<vmem>>, vector<1x8xf32>
    tpu.vector_store %arg4[%c0_8, %c0_9], %18 {strides = array<i32>} : memref<1x8xf32, #tpu.memory_space<vmem>>, vector<1x8xf32>,
    %c0_i32_10 = arith.constant 0 : i32
    %20 = arith.cmpi eq, %arg0, %c0_i32_10 : i32
    %21 = arith.extui %20 : i1 to i32
    %c0_i32_11 = arith.constant 0 : i32
    %22 = arith.cmpi ne, %21, %c0_i32_11 : i32
    scf.if %22 {
      %c0_12 = arith.constant 0 : index
      %c0_13 = arith.constant 0 : index
      %23 = vector.load %arg4[%c0_12, %c0_13] : memref<1x8xf32, #tpu.memory_space<vmem>>, vector<1x8xf32>
      %24 = vector.shape_cast %23 : vector<1x8xf32> to vector<1x1x8xf32>
      %cst_14 = arith.constant dense<0.000000e+00> : vector<1xf32>
      %25 = vector.multi_reduction <add>, %24, %cst_14 [1, 2] : vector<1x1x8xf32> to vector<1xf32>
      %26 = vector.shape_cast %25 : vector<1xf32> to vector<1x1x1xf32>
      %27 = vector.extract %26[0, 0, 0] : f32 from vector<1x1x1xf32>
      %cst_15 = arith.constant 0.000000e+00 : f32
      %28 = arith.subf %cst_15, %27 : f32
      %cst_16 = arith.constant 6.400000e+01 : f32
      %29 = arith.divf %28, %cst_16 : f32
      %c0_17 = arith.constant 0 : index
      %c0_18 = arith.constant 0 : index
      %30 = memref.load %arg3[%c0_17, %c0_18] : memref<1x1xf32, #tpu.memory_space<smem>>
      memref.store %29, %arg3[%c0_17, %c0_18] : memref<1x1xf32, #tpu.memory_space<smem>>
    } else {
    }
    return
  }
  func.func @transform_0(%arg0: i32) -> (i32, i32) {
    %c0_i32 = arith.constant 0 : i32
    %c0_i32_0 = arith.constant 0 : i32
    return %arg0, %c0_i32 : i32, i32
  }
  func.func @transform_1(%arg0: i32) -> (i32, i32) {
    %c0_i32 = arith.constant 0 : i32
    %c0_i32_0 = arith.constant 0 : i32
    return %arg0, %c0_i32 : i32, i32
  }
  func.func @transform_2(%arg0: i32) -> (i32, i32) {
    %c0_i32 = arith.constant 0 : i32
    %c0_i32_0 = arith.constant 0 : i32
    %c0_i32_1 = arith.constant 0 : i32
    return %c0_i32, %c0_i32_0 : i32, i32
  }
}

</mosaic_0001>

<bundles_post_ra>
// kernel: tpu_custom_call.1
= control target key start
LH: loop header
LB: loop body
LE: loop exit
PB: predicated region body
PF: predicated region fallthrough
CT: control target
= control target key end

     0   :  { %7 = vsyncpa [#allocation4], 0  ;;  %s243_s0 = inlined_call_operand.hbm [shape: f32[8,8], index: 0, kind: input, shape index: {}]   ;;  %s244_s1 = inlined_call_operand.hbm [shape: f32[8,1], index: 1, kind: input, shape index: {}]   ;;  %s245_s2 = inlined_call_operand.hbm [shape: f32[1,1], index: 2, kind: output, shape index: {}]  }
   0x1   :  { %8 = vsyncpa [#allocation7], 0 }
   0x2   :  { %9 = vsyncpa [#allocation5], 0  ;;  %s184_s9 = smov [#allocation3]   ;;  %s185_s11 = smov [#allocation6]  }
   0x3   :  { %s16_s10 = sshll.u32 %s184_s9, 4  ;;  %s26_s12 = sshll.u32 %s185_s11, 4  ;;  %s17_s10 = int_to_ptr.vmem [resolvable:$true] %s16_s10  ;;  %s27_s12 = int_to_ptr.vmem [resolvable:$true] %s26_s12 }
   0x4   :  { %s124_s15 = scalar_lea.hbm %s243_s0, 128 }
   0x5   :  { %p125_p0 = scmp.ne.s32.totalorder %s243_s0, %s124_s15  ;;  %p128_p1 = scmp.lt.u32.totalorder %s124_s15, %s243_s0 }
   0x7   :  { %p130_p2 = pnand %p128_p1, %p125_p0 }
   0x9   :  { %133 = shalt.err (!%p130_p2)
}
   0xa   :  { %s134_s20 = scalar_lea.vmem %s17_s10, 128  ;;  %p139_p4 = scmp.lt.s32.totalorder %s17_s10, %s17_s10 }
   0xb   :  { %p135_p3 = scmp.ne.s32.totalorder %s17_s10, %s134_s20  ;;  %p140_p5 = scmp.lt.s32.totalorder %s134_s20, %s134_s20 }
   0xd   :  { %p141_p6 = por %p140_p5, %p139_p4 }
   0xf   :  { %p142_p7 = pnand %p141_p6, %p135_p3 }
  0x11   :  { %145 = shalt.err (!%p142_p7)
}
  0x12   :  { %19 = dma.hbm_to_vmem [thread:$0]  %s243_s0, 128, %s17_s10, [#allocation4]  }
  0x13   :  { %s146_s25 = scalar_lea.hbm %s244_s1, 128 }
  0x14   :  { %p147_p8 = scmp.ne.s32.totalorder %s244_s1, %s146_s25  ;;  %p150_p9 = scmp.lt.u32.totalorder %s146_s25, %s244_s1 }
  0x16   :  { %p152_p10 = pnand %p150_p9, %p147_p8 }
  0x18   :  { %155 = shalt.err (!%p152_p10)
}
  0x19   :  { %s156_s30 = scalar_lea.vmem %s27_s12, 128  ;;  %p161_p12 = scmp.lt.s32.totalorder %s27_s12, %s27_s12 }
  0x1a   :  { %p157_p11 = scmp.ne.s32.totalorder %s27_s12, %s156_s30  ;;  %p162_p13 = scmp.lt.s32.totalorder %s156_s30, %s156_s30 }
  0x1c   :  { %p163_p0 = por %p162_p13, %p161_p12 }
  0x1e   :  { %p164_p1 = pnand %p163_p0, %p157_p11 }
  0x20   :  { %167 = shalt.err (!%p164_p1)
}
  0x21   :  { %29 = dma.hbm_to_vmem [thread:$0]  %s244_s1, 128, %s27_s12, [#allocation7]  }
  0x22   :  { %178 = dma.done.wait [#allocation4], 128  }
  0x23   :  { %179 = vsyncadd [#allocation4], 4294967168 }
  0x24   :  { %180 = dma.done.wait [#allocation7], 128  }
  0x25   :  { %181 = vsyncadd [#allocation7], 4294967168  ;;  %v186_v0 = vmov 0   ;;  %v43_v1 = vld [vmem:[#allocation6] sm:$0xff]  ;;  %vm40_vm0 = vcmask 57344   ;;  %v187_v2 = vmov 0.0  }
  0x26   :  { %119 = vset.pattern.permute.xlu0 %v186_v0  ;;  %41 = vst.msk [vmem:[#allocation2] sm:$0x1] %vm40_vm0, %v187_v2  ;;  %v42_v3 = vld [vmem:[#allocation3] sm:$0xff]  ;;  %vm66_vm2 = vcmask 64512   ;;  %s168_s8 = scalar_lea.hbm %s245_s2, 16 }
  0x27   :  { %46 = vperm.xlu0 %119, %v43_v1   ;;  %p169_p2 = scmp.ne.s32.totalorder %s245_s2, %s168_s8  ;;  %p172_p3 = scmp.lt.u32.totalorder %s168_s8, %s245_s2 }
  0x29   :  { %p174_p4 = pnand %p172_p3, %p169_p2 }
  0x2d   :  { %v65_v26 = vld [vmem:[#allocation2] sm:$0x1] }
  0xa6   :  { %v47_v4 = vpop.permute.xlu0 %46 }
  0xa7   :  { %v49_v5 = vsub.f32 %v47_v4, %v42_v3 }
  0xa9   :  { %v51_v6 = vand.u32 2147483647, %v49_v5  ;;  %v50_v17 = vmin.f32 %v49_v5, 0.0 }
  0xab   :  { %v52_v7 = vsub.f32 0.0, %v51_v6 }
  0xad   :  { %v53_v8 = vmul.f32 1.442695, %v52_v7 }
  0xaf   :  { %120 = vpow2.f32 %v53_v8 }
  0xb9   :  { %v121_v9 = vpop.eup %120 }
  0xba   :  { %v55_v10 = vadd.f32 1.0, %v121_v9  ;;  %v58_v11 = vmul.f32 -0.5, %v121_v9  ;;  %v61_v13 = vand.u32 2147483647, %v121_v9 }
  0xbc   :  { %122 = vlog2.f32 %v55_v10  ;;  %v59_v12 = vadd.f32 1.0, %v58_v11  ;;  %vm62_vm1 = vcmp.lt.f32.partialorder %v61_v13, 0.0004427343 }
  0xbe   :  { %v60_v16 = vmul.f32 %v121_v9, %v59_v12 }
  0xc6   :  { %v123_v14 = vpop.eup %122 }
  0xc7   :  { %v57_v15 = vmul.f32 0.6931472, %v123_v14 }
  0xc9   :  { %v63_v18 = vsel %vm62_vm1, %v60_v16, %v57_v15 }
  0xca   :  { %v64_v19 = vsub.f32 %v50_v17, %v63_v18 }
  0xcc   :  { %v67_v20 = vsel %vm66_vm2, %v64_v19, 0.0 }
  0xcd   :  { %v68_v21 = vrot.slane %v67_v20, 4 }
  0xcf   :  { %v69_v22 = vadd.f32 %v68_v21, %v67_v20 }
  0xd1   :  { %v70_v23 = vrot.slane %v69_v22, 2 }
  0xd3   :  { %v71_v24 = vadd.f32 %v70_v23, %v69_v22 }
  0xd5   :  { %v72_v25 = vrot.slane %v71_v24, 1 }
  0xd7   :  { %v73_v27 = vadd.f32 %v72_v25, %v71_v24 }
  0xd9   :  { %v74_v28 = vadd.f32 %v73_v27, %v65_v26 }
  0xdb   :  { %76 = vst.msk [vmem:[#allocation2] sm:$0x1] %vm40_vm0, %v74_v28 }
  0xe2   :  { %v80_v29 = vld [vmem:[#allocation2] sm:$0x1] }
  0xe3   :  { %v81_v30 = vsel %vm40_vm0, %v80_v29, 0.0 }
  0xe4   :  { %82 = vadd.xlane.f32.xlu0 %v81_v30 }
 0x171   :  { %v83_v31 = vpop.xlane.xlu0 %82 }
 0x172   :  { %v84_v32 = vrot.slane %v83_v31, 4 }
 0x174   :  { %v85_v33 = vadd.f32 %v84_v32, %v83_v31 }
 0x176   :  { %v86_v34 = vrot.slane %v85_v33, 2 }
 0x178   :  { %v87_v35 = vadd.f32 %v86_v34, %v85_v33 }
 0x17a   :  { %v88_v36 = vrot.slane %v87_v35, 1 }
 0x17c   :  { %v89_v37 = vadd.f32 %v88_v36, %v87_v35 }
 0x17e   :  { %112 = vpush %v89_v37 }
 0x1af   :  { %s113_s1 = spop %112 }
 0x1b0   :  { %s91_s4 = ssub.f32 0.0, %s113_s1 }
 0x1b2   :  { %s94_s5 = smul.f32 0.015625, %s91_s4 }
 0x1b4   :  { %96 = sst [smem:[#allocation8]] %s94_s5 }
 0x1b5   :  { %177 = shalt.err (!%p174_p4)
}
 0x1b6   :  { %s188_s13 = smov [#allocation8]  }
 0x1b7   :  { %104 = dma.smem_to_hbm %s188_s13, 16, %s245_s2, [#allocation5]  }
 0x1b8   :  { %182 = dma.done.wait [#allocation5], 16  }
 0x1b9   :  { %183 = vsyncadd [#allocation5], 4294967280 }
 0x1ba   :  { %108 = sfence }
 0x1bb   :  { %109 = vsyncpa [#allocation4], 1 }
 0x1bc   :  { %110 = vsyncpa [#allocation7], 1 }
 0x1bd   :  { %111 = vsyncpa [#allocation5], 1 }

</bundles_post_ra>
